<compile_context>
chip_gen: v6e
topology: v6e:2x2x1
jax: 0.10.0
libtpu: 0.0.40
codegen_flags: <defaults>
</compile_context>

<pallas_src>
import jax
import jax.numpy as jnp
from jax.experimental import pallas as pl
from jax.experimental.pallas import tpu as pltpu

_LANE = 128


def _add_coords_kernel(x_ref, coord_ref, o_ref):
    # x_ref:     (1, C, T)         input-channel tile (lane-dense flattened H*W)
    # coord_ref: (extra, T)        precomputed xx/yy(/rr) planes for this tile
    # o_ref:     (1, C+extra, T)   output tile
    C = x_ref.shape[1]
    o_ref[0, :C, :] = x_ref[0, :, :]
    o_ref[0, C:, :] = coord_ref[...]


def _round_down(a, m):
    return (a // m) * m


def _pick_lane_tile(hw, c_in, c_out, extra, itemsize, lane_tile=None):
    """Largest 128-multiple lane tile whose double-buffered blocks fit the budget."""
    if lane_tile is not None:
        t = max(_LANE, _round_down(int(lane_tile), _LANE))
    else:
        # Double-buffered input + output + coord blocks must fit comfortably
        # under the smallest default scoped-VMEM limit (v5e: 16 MiB).
        budget_bytes = 8 * 1024 * 1024
        per_lane_bytes = 2 * (c_in + c_out + extra) * itemsize
        t = _round_down(max(_LANE, budget_bytes // per_lane_bytes), _LANE)
        t = min(t, 2048)  # ~512+ lanes already reaches ~85% of HBM roofline
    if t >= hw:
        return hw  # single full-extent block (legal even if not a 128-multiple)
    return t


def add_coords(x: jax.Array, with_r: bool = False, *, lane_tile=None) -> jax.Array:
    """Pallas implementation of AddCoords.forward (NCHW)."""
    B, C, H, W = x.shape
    extra = 3 if with_r else 2
    out_c = C + extra
    hw = H * W

    # ---- coordinate planes: computed once, tiny (extra * H * W elements) ----
    row = jax.lax.broadcasted_iota(jnp.float32, (H, W), 0)  # x index (varies on H)
    col = jax.lax.broadcasted_iota(jnp.float32, (H, W), 1)  # y index (varies on W)
    xx = (row / jnp.float32(H - 1)) * 2.0 - 1.0
    yy = (col / jnp.float32(W - 1)) * 2.0 - 1.0
    xx_c = xx.astype(x.dtype)
    yy_c = yy.astype(x.dtype)
    planes = [xx_c, yy_c]
    if with_r:
        rr = jnp.sqrt((xx_c - 0.5) ** 2 + (yy_c - 0.5) ** 2)
        planes.append(rr.astype(x.dtype))
    coords = jnp.stack(planes, axis=0).reshape(extra, hw)

    # ---- lane-dense flatten: (B,C,H,W) -> (B,C,H*W) (free view for NCHW) ----
    x_flat = x.reshape(B, C, hw)

    t = _pick_lane_tile(hw, C, out_c, extra, jnp.dtype(x.dtype).itemsize, lane_tile)
    nt = pl.cdiv(hw, t)

    out_flat = pl.pallas_call(
        _add_coords_kernel,
        out_shape=jax.ShapeDtypeStruct((B, out_c, hw), x.dtype),
        grid_spec=pltpu.PrefetchScalarGridSpec(
            num_scalar_prefetch=0,
            # Spatial tile axis outer (shardable across v7x TensorCores),
            # batch axis inner (coord block index is constant across it, so the
            # pipeline skips re-DMA of the coordinate planes).
            grid=(nt, B),
            in_specs=[
                pl.BlockSpec((1, C, t), lambda ti, b: (b, 0, ti)),
                pl.BlockSpec((extra, t), lambda ti, b: (0, ti)),
            ],
            out_specs=pl.BlockSpec((1, out_c, t), lambda ti, b: (b, 0, ti)),
        ),
        compiler_params=pltpu.CompilerParams(
            dimension_semantics=("parallel", "parallel"),
        ),
    )(x_flat, coords)

    return out_flat.reshape(B, out_c, H, W)


def add_coords_ref(x: jax.Array, with_r: bool = False) -> jax.Array:
    """Pure-JAX reference matching the PyTorch module exactly."""
    B, C, H, W = x.shape
    row = jnp.arange(H, dtype=jnp.float32)[:, None]
    col = jnp.arange(W, dtype=jnp.float32)[None, :]
    xx = jnp.broadcast_to(row / (H - 1) * 2.0 - 1.0, (H, W)).astype(x.dtype)
    yy = jnp.broadcast_to(col / (W - 1) * 2.0 - 1.0, (H, W)).astype(x.dtype)
    xx_b = jnp.broadcast_to(xx, (B, 1, H, W))
    yy_b = jnp.broadcast_to(yy, (B, 1, H, W))
    parts = [x, xx_b, yy_b]
    if with_r:
        rr = jnp.sqrt((xx_b - 0.5) ** 2 + (yy_b - 0.5) ** 2)
        parts.append(rr)
    return jnp.concatenate(parts, axis=1)


if __name__ == "__main__":
    key = jax.random.PRNGKey(0)
    B, C, H, W = 2, 4, 16, 16
    x = jax.random.normal(key, (B, C, H, W), dtype=jnp.float32)

    # with_r=False path.
    out = jax.block_until_ready(add_coords(x, with_r=False))
    ref = add_coords_ref(x, with_r=False)
    assert out.shape == (B, C + 2, H, W), out.shape
    assert jnp.allclose(out, ref, atol=1e-6, rtol=1e-6)

    # with_r=True path.
    out_r = jax.block_until_ready(add_coords(x, with_r=True))
    ref_r = add_coords_ref(x, with_r=True)
    assert out_r.shape == (B, C + 3, H, W), out_r.shape
    assert jnp.allclose(out_r, ref_r, atol=1e-6, rtol=1e-6)

    # Exercise the multi-tile path (non-square spatial dims, partial last tile).
    x2 = jax.random.normal(jax.random.PRNGKey(1), (2, 4, 24, 40), dtype=jnp.float32)
    out2 = jax.block_until_ready(add_coords(x2, with_r=True, lane_tile=128))
    ref2 = add_coords_ref(x2, with_r=True)
    assert out2.shape == (2, 4 + 3, 24, 40), out2.shape
    assert jnp.allclose(out2, ref2, atol=1e-6, rtol=1e-6)

    print("KERNEL_OK")
</pallas_src>

<mosaic_0001>
module attributes {stable_mosaic.version = 11 : i64} {
  func.func @_add_coords_kernel(%arg0: i32, %arg1: i32, %arg2: memref<1x4x256xf32, #tpu.memory_space<vmem>>, %arg3: memref<2x256xf32, #tpu.memory_space<vmem>>, %arg4: memref<1x6x256xf32, #tpu.memory_space<vmem>>) attributes {dimension_semantics = [#tpu.dimension_semantics<parallel>, #tpu.dimension_semantics<parallel>], iteration_bounds = array<i64: 1, 2>, scalar_prefetch = 0 : i64, scratch_operands = 0 : i64, tpu.core_type = #tpu.core_type<tc>, window_params = [{transform_indices = @transform_0, window_bounds = array<i64: 1, 4, 256>}, {transform_indices = @transform_1, window_bounds = array<i64: 2, 256>}, {transform_indices = @transform_2, window_bounds = array<i64: 1, 6, 256>}]} {
    %c0 = arith.constant 0 : index
    %c0_0 = arith.constant 0 : index
    %c0_1 = arith.constant 0 : index
    %0 = vector.load %arg2[%c0, %c0_0, %c0_1] : memref<1x4x256xf32, #tpu.memory_space<vmem>>, vector<1x4x256xf32>
    %1 = vector.shape_cast %0 : vector<1x4x256xf32> to vector<4x256xf32>
    %c0_2 = arith.constant 0 : index
    %c0_3 = arith.constant 0 : index
    %c0_4 = arith.constant 0 : index
    %2 = vector.load %arg4[%c0_2, %c0_3, %c0_4] : memref<1x6x256xf32, #tpu.memory_space<vmem>>, vector<1x4x256xf32>
    %3 = vector.shape_cast %2 : vector<1x4x256xf32> to vector<4x256xf32>
    %4 = vector.shape_cast %1 : vector<4x256xf32> to vector<1x4x256xf32>
    tpu.vector_store %arg4[%c0_2, %c0_3, %c0_4], %4 {strides = array<i32>} : memref<1x6x256xf32, #tpu.memory_space<vmem>>, vector<1x4x256xf32>,
    %c0_5 = arith.constant 0 : index
    %c0_6 = arith.constant 0 : index
    %5 = vector.load %arg3[%c0_5, %c0_6] : memref<2x256xf32, #tpu.memory_space<vmem>>, vector<2x256xf32>
    %c0_7 = arith.constant 0 : index
    %c4 = arith.constant 4 : index
    %c0_8 = arith.constant 0 : index
    %6 = vector.load %arg4[%c0_7, %c4, %c0_8] : memref<1x6x256xf32, #tpu.memory_space<vmem>>, vector<1x2x256xf32>
    %7 = vector.shape_cast %6 : vector<1x2x256xf32> to vector<2x256xf32>
    %8 = vector.shape_cast %5 : vector<2x256xf32> to vector<1x2x256xf32>
    tpu.vector_store %arg4[%c0_7, %c4, %c0_8], %8 {strides = array<i32>} : memref<1x6x256xf32, #tpu.memory_space<vmem>>, vector<1x2x256xf32>,
    return
  }
  func.func @transform_0(%arg0: i32, %arg1: i32) -> (i32, i32, i32) {
    %c0_i32 = arith.constant 0 : i32
    %c0_i32_0 = arith.constant 0 : i32
    return %arg1, %c0_i32, %arg0 : i32, i32, i32
  }
  func.func @transform_1(%arg0: i32, %arg1: i32) -> (i32, i32) {
    %c0_i32 = arith.constant 0 : i32
    %c0_i32_0 = arith.constant 0 : i32
    return %c0_i32, %arg0 : i32, i32
  }
  func.func @transform_2(%arg0: i32, %arg1: i32) -> (i32, i32, i32) {
    %c0_i32 = arith.constant 0 : i32
    %c0_i32_0 = arith.constant 0 : i32
    return %arg1, %c0_i32, %arg0 : i32, i32, i32
  }
}

</mosaic_0001>

<bundles_post_ra>
// kernel: tpu_custom_call.1
= control target key start
LH: loop header
LB: loop body
LE: loop exit
PB: predicated region body
PF: predicated region fallthrough
CT: control target
= control target key end

     0   :  { %7 = vsyncpa [#allocation3], 0  ;;  %s672_s0 = inlined_call_operand.hbm [shape: f32[2,4,256], index: 0, kind: input, shape index: {}]   ;;  %s673_s1 = inlined_call_operand.hbm [shape: f32[2,256], index: 1, kind: input, shape index: {}]   ;;  %s674_s2 = inlined_call_operand.vmem [shape: f32[2,6,256], index: 2, kind: output, shape index: {}]  }
   0x1   :  { %9 = vsyncpa [#allocation3 + $0x1], 0 }
   0x2   :  { %10 = vsyncpa [#allocation5], 0  ;;  %s551_s9 = smov 0   ;;  %s553_s10 = smov 0  }
   0x3   :  { %s555_s11 = smov 0   ;;  %s557_s12 = smov 0  }
   0x4   :  { %s559_s13 = smov 0   ;;  %s561_s14 = smov 0  }
   0x5 LB: > { %s339_s15 = sadd.s32 4294967295, %s532_s14   ;;  %p50_p0 = scmp.ne.s32.totalorder %s516_s10, %s512_s9  ;;  %s532_s14 = sphi %s561_s14, %s16_s14   ;;  %s528_s13 = sphi %s559_s13, %s684_s13   ;;  %s524_s12 = sphi %s557_s12, %s683_s12   ;;  %s520_s11 = sphi %s555_s11, %s682_s11   ;;  %s516_s10 = sphi %s553_s10, %s681_s10   ;;  %s512_s9 = sphi %s551_s9, %s680_s9  }
   0x6   : > { %p581_p1 = scmp.eq.s32.totalorder %s339_s15, 0  ;;  %p341_p2 = scmp.ge.s32.totalorder %s532_s14, 1 }
   0x7   : > { %p115_p3 = scmp.lt.s32.totalorder %s532_s14, 3  ;;  %s534_s19 = smov [#allocation4]  }
   0x8   : > { %p589_p4 = por %p581_p1, %p50_p0  ;;  %s131_s20 = sshll.u32 %s534_s19, 4  ;;  %s132_s20 = int_to_ptr.vmem [resolvable:$true] %s131_s20 }
   0x9   : > { %p593_p5 = pnand %p341_p2, %p115_p3  ;;  %s25_s22 = sadd.s32 1, %s528_s13 }
   0xa   : > { %s37_s23 = sadd.s32 1, %s520_s11  ;;  %p26_p8 = scmp.ge.s32.totalorder %s25_s22, 2 }
   0xb   : > { %p363_p6 = pneg %p593_p5  ;;  %s435_s24 = scalar_lea.vmem %s132_s20, 64 }
   0xc   : > { %p436_p10 = scmp.ne.s32.totalorder %s132_s20, %s435_s24  ;;  %p443_p13 = scmp.lt.s32.totalorder %s132_s20, %s132_s20 }
   0xd   : > { %p601_p7 = pnand %p363_p6, %p581_p1  ;;  %p444_p0 = scmp.lt.s32.totalorder %s435_s24, %s435_s24 }
   0xf   : > { %p426_p9 = pneg %p601_p7  ;;  %p445_p2 = por %p444_p0, %p443_p13 }
  0x11   : > { %p438_p11 = pnand %p436_p10, %p426_p9 }
  0x13   : > { %p439_p12 = pneg %p438_p11 }
  0x15   : > { %p446_p3 = pnand %p445_p2, %p439_p12 }
  0x17   : > { %449 = shalt.err (!%p446_p3)
}
  0x18   : > { %366 = dma.hbm_to_vmem [thread:$0]  (!%p601_p7), %s673_s1, 64, %s132_s20, [#allocation5]  }
  0x19   : > { %s686_s22 = smov (%p26_p8, %s25_s22), 0  ;;  %p44_p6 = scmp.ne.s32.totalorder %s520_s11, %s516_s10 }
  0x1a   : > { %p45_p9 = scmp.eq.s32.totalorder %s532_s14, 0  ;;  %s32_s27 = ssub.s32 %s528_s13, %s686_s22 }
  0x1b   : > { %p372_p10 = scmp.lt.s32.totalorder %s532_s14, 2  ;;  %p35_p11 = scmp.eq.s32.totalorder %s32_s27, 0 }
  0x1c   : > { %p46_p12 = por %p45_p9, %p44_p6  ;;  %s142_s28 = sand.u32 1, %s520_s11  }
  0x1d   : > { %s355_s29 = sshll.u32 %s528_s13, 7  ;;  %s344_s3 = sshll.u32 %s142_s28, 3 }
  0x1e   : > { %s625_s30 = scalar_select %p35_p11, %s520_s11, %s37_s23  }
  0x1f   : > { %s154_s6 = scalar_lea.hbm %s672_s0, %s355_s29  ;;  %s146_s7 = scalar_lea.vmem [#allocation2], %s344_s3 }
  0x20   : > { %s156_s8 = sshll.u32 %s146_s7, 4  ;;  %p630_p7 = pnand %p372_p10, %p46_p12  ;;  %s157_s8 = int_to_ptr.vmem [resolvable:$true] %s156_s8 }
  0x21   : > { %s143_s15 = scalar_lea.sflag [#allocation3], %s142_s28  ;;  %s463_s19 = scalar_lea.vmem %s157_s8, 128 }
  0x22   : > { %p452_p8 = pneg %p630_p7  ;;  %p464_p13 = scmp.ne.s32.totalorder %s157_s8, %s463_s19 }
  0x23   : > { %s535_s20 = smov [#allocation2]  }
  0x24   : > { %p466_p0 = pnand %p464_p13, %p452_p8  ;;  %s468_s21 = sshll.u32 %s535_s20, 4  ;;  %s469_s21 = int_to_ptr.vmem [resolvable:$false] %s468_s21 }
  0x25   : > { %s470_s23 = scalar_lea.vmem %s469_s21, 256  ;;  %p471_p3 = scmp.lt.s32.totalorder %s157_s8, %s469_s21 }
  0x26   : > { %p467_p2 = pneg %p466_p0  ;;  %p472_p6 = scmp.lt.s32.totalorder %s470_s23, %s463_s19 }
  0x28   : > { %p473_p9 = por %p472_p6, %p471_p3 }
  0x2a   : > { %p474_p10 = pnand %p473_p9, %p467_p2 }
  0x2c   : > { %477 = shalt.err (!%p474_p10)
}
  0x2d   : > { %370 = dma.hbm_to_vmem [thread:$0]  (!%p630_p7), %s154_s6, 128, %s157_s8, %s143_s15  }
  0x2e   : > { %165 = sbr.rel (%p593_p5) target bundleno = 61 (0x3d), region = 28  ;;  %s167_s24 = sand.u32 (!%p593_p5), 1, %s516_s10  }
  0x2f   : > { %s348_s25 = sshll.u32 (!%p593_p5), %s167_s24, 3  ;;  %s168_s26 = scalar_lea.sflag (!%p593_p5), [#allocation3], %s167_s24 }
  0x30   : > { %s171_s27 = scalar_lea.vmem (!%p593_p5), [#allocation2], %s348_s25 }
  0x33   : > { %503 = dma.done.wait (%p589_p4), %s168_s26, 128  }
  0x34   : > { %505 = vsyncadd (%p589_p4), %s168_s26, 4294967168 }
  0x35   : > { %507 = dma.done.wait (%p581_p1), [#allocation5], 64  }
  0x36   : > { %509 = vsyncadd (%p581_p1), [#allocation5], 4294967232  ;;  %p203_p5 = scmp.lt.s32.totalorder %s524_s12, 1  ;;  %v212_v0 = vld [vmem:[%s171_s27] sm:$0xff] }
  0x37   : > { %v352_v1 = vld.sshfl [vmem:[#allocation4] sm:$0x33 pattern:$0x76325410]  ;;  %v214_v2 = vcombine.high %v212_v0, %v212_v0 }
  0x38   : > { %s688_s12 = smov (!%p203_p5, %s524_s12), 1  ;;  %v227_v3 = vcombine.low %v352_v1, %v352_v1 }
  0x39   : > { %s356_s18 = sshll.u32 %s688_s12, 4 }
  0x3a   : > { %s210_s3 = scalar_lea.vmem %s674_s2, %s356_s18 }
  0x3b   : > { %216 = vst [vmem:[%s210_s3] sm:$0xf] %v212_v0  ;;  %231 = vst [vmem:[%s210_s3 + $0x8] sm:$0x30] %v352_v1 }
  0x3c   : > { %217 = vst [vmem:[%s210_s3 + $0x8] sm:$0xf] %v214_v2  ;;  %230 = vst [vmem:[%s210_s3] sm:$0x30] %v227_v3 }
  0x3d PF: > { %s16_s14 = sadd.s32 1, %s532_s14   ;;  %s680_s9 = smov %s516_s10 }
  0x3e   : > { %p13_p1 = scmp.ge.s32.totalorder %s16_s14, 4   ;;  %s681_s10 = smov %s520_s11 }
  0x3f   : > { %s682_s11 = smov %s625_s30  ;;  %s683_s12 = smov %s528_s13 }
  0x40   : > { %s684_s13 = smov %s686_s22  ;;  %15 = sbr.rel (!%p13_p1) target bundleno = 5 (0x5), region = 73 }
  0x45   :  { %262 = vsyncpa [#allocation3], 1 }
  0x46   :  { %264 = vsyncpa [#allocation3 + $0x1], 1 }
  0x47   :  { %265 = vsyncpa [#allocation5], 1 }

</bundles_post_ra>
